<compile_context>
chip_gen: v5e
topology: v5e:2x2
jax: 0.10.0
libtpu: 0.0.40
codegen_flags: <defaults>
</compile_context>

<pallas_src>
import functools

import jax
import jax.numpy as jnp
from jax.experimental import pallas as pl
from jax.experimental.pallas import tpu as pltpu


def _round_up(x, m):
    return (x + m - 1) // m * m


def _pad_to(x, shape):
    pads = [(0, s - d) for d, s in zip(x.shape, shape)]
    if all(p == (0, 0) for p in pads):
        return x
    return jnp.pad(x, pads)


def _vmem_capacity_bytes():
    """Physical per-TensorCore VMEM, with conservative fallbacks."""
    try:
        return int(pltpu.get_tpu_info().vmem_capacity_bytes)
    except Exception:
        try:
            kind = jax.devices()[0].device_kind.lower()
        except Exception:
            kind = ""
        # v5e / v6e parts have 128 MiB per core; assume 64 MiB otherwise (v7x).
        if ("v5" in kind and "lite" in kind) or "v5e" in kind or "v6" in kind:
            return 128 * 2**20
        return 64 * 2**20


def _mlp_kernel(x_ref, wh_ref, bh_ref, wo_ref, bo_ref, y_ref, pre_ref, h_ref,
                *, wh_streamed):
    """One (batch-tile, layer) grid step.

    x_ref   : (TB, D)               input activations for this batch tile
    wh_ref  : (1|layers, D, D)      hidden weight(s), (in, out) layout
    bh_ref  : (layers, 1, D)        hidden biases (resident, f32)
    wo_ref  : (D, O)                output weight (resident)
    bo_ref  : (1, O)                output bias (resident, f32)
    y_ref   : (TB, O)               logits               (written on last step)
    pre_ref : (TB, D)               pre-last activations (written on last step)
    h_ref   : (TB, D)               f32 VMEM scratch carrying activations
    """
    l = pl.program_id(1)
    cdt = x_ref.dtype

    def hidden_step(h_in):
        w = wh_ref[0] if wh_streamed else wh_ref[l]
        h = jnp.dot(h_in, w, preferred_element_type=jnp.float32)
        h = jnp.maximum(h + bh_ref[l].astype(jnp.float32), 0.0)
        h_ref[...] = h

    # l == 0: feed the input tile straight into the first matmul (no copy).
    @pl.when(l == 0)
    def _():
        hidden_step(x_ref[...])

    @pl.when(l != 0)
    def _():
        hidden_step(h_ref[...].astype(cdt))

    @pl.when(l == pl.num_programs(1) - 1)
    def _():
        h = h_ref[...]
        pre_ref[...] = h.astype(pre_ref.dtype)
        y = jnp.dot(h.astype(wo_ref.dtype), wo_ref[...],
                    preferred_element_type=jnp.float32)
        y_ref[...] = (y + bo_ref[...].astype(jnp.float32)).astype(y_ref.dtype)


def prepare_params(params, *, compute_dtype=jnp.bfloat16):
    """One-time parameter prep: pad to lane-dense tiles + cast.

    Call once and reuse; keeps the weight pad/cast pass out of every forward.
    """
    wh, bh, wo, bo = params["wh"], params["bh"], params["wo"], params["bo"]
    layers, D, _ = wh.shape
    O = wo.shape[-1]
    Dp = _round_up(D, 128)
    Op = _round_up(O, 128)
    cdt = jnp.dtype(compute_dtype)
    return {
        "wh": _pad_to(wh, (layers, Dp, Dp)).astype(cdt),
        "bh": _pad_to(bh.reshape(layers, 1, D), (layers, 1, Dp)).astype(jnp.float32),
        "wo": _pad_to(wo, (Dp, Op)).astype(cdt),
        "bo": _pad_to(bo.reshape(1, O), (1, Op)).astype(jnp.float32),
        "layers": layers, "D": D, "O": O, "Dp": Dp, "Op": Op,
        "compute_dtype": cdt,
    }


def simple_classifier_forward(encz_last, prep, *, block_b=None):
    """Runs the fused MLP kernel. Returns (y, encz_pre_last)."""
    B, D = encz_last.shape
    assert D == prep["D"], "feature dim mismatch with prepared params"
    layers, Dp, Op, O = prep["layers"], prep["Dp"], prep["Op"], prep["O"]
    assert layers >= 1, "SimpleClassifier MLP needs at least one hidden layer"
    cdt = prep["compute_dtype"]
    isz = cdt.itemsize

    # Sublane tile for the compute dtype (8 for f32, 16 for bf16).
    sub = 8 * (4 // isz)
    Bp_sub = _round_up(B, sub)

    # Chip-aware VMEM budget: ~85% of physical per-core VMEM leaves headroom
    # for Mosaic internal scratch / semaphores (v7x ~54 MiB, v5e/v6e ~108 MiB).
    budget = int(0.85 * _vmem_capacity_bytes())

    # Keep ALL hidden weights resident when (conservatively double-buffered)
    # they fit in half the budget; otherwise stream one layer per grid step.
    wh_resident = 2 * (layers * Dp * Dp + Dp * Op) * isz <= budget // 2

    if block_b is None:
        # When streaming, arithmetic intensity per hidden layer is
        # ~2*TB/itemsize flop/byte on the streamed (Dp,Dp) weight, so a big
        # batch tile is needed to stay MXU-bound; resident weights relax this.
        block_b = 512 if wh_resident else 1024
    TB = _round_up(min(block_b, Bp_sub), sub)
    # Give the "parallel" batch axis at least two tiles (v7x has 2 TCs) when
    # the batch is large enough that splitting costs essentially nothing.
    if Bp_sub >= 256 and Bp_sub // TB < 2:
        TB = _round_up(-(-Bp_sub // 2), sub)

    def vmem_estimate(tb):
        wh_elems = (layers if wh_resident else 1) * Dp * Dp
        return (2 * tb * Dp * isz            # x tile (double-buffered)
                + 2 * wh_elems * isz         # hidden weights (conservative x2)
                + 2 * layers * 8 * Dp * 4    # hidden biases (sublane padded)
                + 2 * Dp * Op * isz          # output weight
                + 2 * 8 * Op * 4             # output bias
                + 2 * tb * Op * 4            # y tile
                + 2 * tb * Dp * 4            # pre tile
                + tb * Dp * 4)               # h scratch

    while vmem_estimate(TB) > budget and TB > sub:
        TB = max(sub, _round_up(TB // 2, sub))

    Bp = _round_up(Bp_sub, TB)
    grid = (Bp // TB, layers)

    x_p = _pad_to(encz_last, (Bp, Dp)).astype(cdt)

    if wh_resident:
        wh_spec = pl.BlockSpec((layers, Dp, Dp), lambda i, l: (0, 0, 0))
    else:
        wh_spec = pl.BlockSpec((1, Dp, Dp), lambda i, l: (l, 0, 0))

    kernel = functools.partial(_mlp_kernel, wh_streamed=not wh_resident)

    y_p, pre_p = pl.pallas_call(
        kernel,
        out_shape=(
            jax.ShapeDtypeStruct((Bp, Op), jnp.float32),
            jax.ShapeDtypeStruct((Bp, Dp), jnp.float32),
        ),
        grid=grid,
        in_specs=[
            pl.BlockSpec((TB, Dp), lambda i, l: (i, 0)),            # x tile
            wh_spec,                                                # hidden W
            pl.BlockSpec((layers, 1, Dp), lambda i, l: (0, 0, 0)),  # hidden b
            pl.BlockSpec((Dp, Op), lambda i, l: (0, 0)),            # out W
            pl.BlockSpec((1, Op), lambda i, l: (0, 0)),             # out b
        ],
        out_specs=(
            pl.BlockSpec((TB, Op), lambda i, l: (i, 0)),
            pl.BlockSpec((TB, Dp), lambda i, l: (i, 0)),
        ),
        scratch_shapes=[pltpu.VMEM((TB, Dp), jnp.float32)],
        compiler_params=pltpu.CompilerParams(
            dimension_semantics=("parallel", "arbitrary"),
            vmem_limit_bytes=budget,
        ),
    )(x_p, prep["wh"], prep["bh"], prep["wo"], prep["bo"])

    return y_p[:B, :O], pre_p[:B, :D]


def init_params(key, input_dims, output_dims, layers):
    """Deterministic synthetic parameters (shapes match the PyTorch MLP)."""
    D, O = input_dims, output_dims
    ks = jax.random.split(key, 4)
    scale_h = 1.0 / jnp.sqrt(jnp.float32(D))
    wh = jax.random.uniform(ks[0], (layers, D, D), jnp.float32, -scale_h, scale_h)
    bh = jax.random.uniform(ks[1], (layers, 1, D), jnp.float32, -scale_h, scale_h)
    wo = jax.random.uniform(ks[2], (D, O), jnp.float32, -scale_h, scale_h)
    bo = jax.random.uniform(ks[3], (1, O), jnp.float32, -scale_h, scale_h)
    return {"wh": wh, "bh": bh, "wo": wo, "bo": bo}


def forward(tdict, prep, *, block_b=None):
    """Mirrors SimpleClassifier.forward: reads/writes a tdict."""
    encz_last = tdict["model/encz_last"]
    y, encz_pre_last = simple_classifier_forward(encz_last, prep, block_b=block_b)
    tdict["model/y"] = y
    tdict["model/encz_pre_last"] = encz_pre_last
    return tdict


if __name__ == "__main__":
    # Small shapes consistent with the module's forward:
    #   encz_last: (batch, input_dims); hidden = input_dims; output = output_dims.
    # NOTE: at these toy sizes the call is launch-overhead bound; the tiling /
    # resident-weight structure only pays off at D,O >= 128 and large batch.
    batch = 8
    input_dims = 32
    output_dims = 4
    layers = 2

    key = jax.random.PRNGKey(0)
    k_x, k_p = jax.random.split(key)
    encz_last = jax.random.normal(k_x, (batch, input_dims), jnp.float32)
    params = init_params(k_p, input_dims, output_dims, layers)

    # Reference in plain JAX (eval-mode MLP: dropout is a no-op).
    h = encz_last
    for l in range(layers):
        h = jnp.maximum(h @ params["wh"][l] + params["bh"][l], 0.0)
    y_ref = h @ params["wo"] + params["bo"]

    # f32 operand (debug / exact) path, tight tolerance.
    prep_f32 = prepare_params(params, compute_dtype=jnp.float32)
    tdict = forward({"model/encz_last": encz_last}, prep_f32)
    y = jax.block_until_ready(tdict["model/y"])
    pre = jax.block_until_ready(tdict["model/encz_pre_last"])
    assert y.shape == (batch, output_dims)
    assert pre.shape == (batch, input_dims)
    assert jnp.allclose(y, y_ref, atol=1e-5), "logits mismatch (f32)"
    assert jnp.allclose(pre, h, atol=1e-5), "pre_last mismatch (f32)"

    # bf16 operands / f32 accumulation (default production path), looser check.
    prep_bf16 = prepare_params(params)  # compute_dtype defaults to bfloat16
    y_bf, pre_bf = simple_classifier_forward(encz_last, prep_bf16)
    y_bf = jax.block_until_ready(y_bf)
    pre_bf = jax.block_until_ready(pre_bf)
    assert jnp.allclose(y_bf, y_ref, atol=5e-2, rtol=5e-2), "logits mismatch (bf16)"
    assert jnp.allclose(pre_bf, h, atol=5e-2, rtol=5e-2), "pre_last mismatch (bf16)"

    print("KERNEL_OK")
</pallas_src>

<mosaic_0001>
module attributes {stable_mosaic.version = 11 : i64} {
  func.func @_mlp_kernel(%arg0: i32, %arg1: i32, %arg2: memref<8x128xf32, #tpu.memory_space<vmem>>, %arg3: memref<2x128x128xf32, #tpu.memory_space<vmem>>, %arg4: memref<2x1x128xf32, #tpu.memory_space<vmem>>, %arg5: memref<128x128xf32, #tpu.memory_space<vmem>>, %arg6: memref<1x128xf32, #tpu.memory_space<vmem>>, %arg7: memref<8x128xf32, #tpu.memory_space<vmem>>, %arg8: memref<8x128xf32, #tpu.memory_space<vmem>>, %arg9: memref<8x128xf32, #tpu.memory_space<vmem>>) attributes {dimension_semantics = [#tpu.dimension_semantics<parallel>, #tpu.dimension_semantics<arbitrary>], iteration_bounds = array<i64: 1, 2>, scalar_prefetch = 0 : i64, scratch_operands = 1 : i64, tpu.core_type = #tpu.core_type<tc>, window_params = [{transform_indices = @transform_0, window_bounds = array<i64: 8, 128>}, {pipeline_mode = #tpu.pipeline_mode<synchronous>, transform_indices = @transform_1, window_bounds = array<i64: 2, 128, 128>}, {pipeline_mode = #tpu.pipeline_mode<synchronous>, transform_indices = @transform_2, window_bounds = array<i64: 2, 1, 128>}, {pipeline_mode = #tpu.pipeline_mode<synchronous>, transform_indices = @transform_3, window_bounds = array<i64: 128, 128>}, {pipeline_mode = #tpu.pipeline_mode<synchronous>, transform_indices = @transform_4, window_bounds = array<i64: 1, 128>}, {transform_indices = @transform_5, window_bounds = array<i64: 8, 128>}, {transform_indices = @transform_6, window_bounds = array<i64: 8, 128>}]} {
    %c0_i32 = arith.constant 0 : i32
    %0 = arith.cmpi eq, %arg1, %c0_i32 : i32
    %1 = arith.extui %0 : i1 to i32
    %c0_i32_0 = arith.constant 0 : i32
    %2 = arith.cmpi ne, %1, %c0_i32_0 : i32
    scf.if %2 {
      %c0 = arith.constant 0 : index
      %c0_4 = arith.constant 0 : index
      %9 = vector.load %arg2[%c0, %c0_4] : memref<8x128xf32, #tpu.memory_space<vmem>>, vector<8x128xf32>
      %10 = arith.index_cast %arg1 : i32 to index
      %c0_5 = arith.constant 0 : index
      %c0_6 = arith.constant 0 : index
      %11 = vector.load %arg3[%10, %c0_5, %c0_6] : memref<2x128x128xf32, #tpu.memory_space<vmem>>, vector<1x128x128xf32>
      %12 = vector.shape_cast %11 : vector<1x128x128xf32> to vector<128x128xf32>
      %cst = arith.constant dense<0.000000e+00> : vector<8x128xf32>
      %13 = tpu.matmul %9, %12, %cst {dimension_numbers = #tpu.dot_dimension_numbers<[1], [0], [0], [1], [0, 0, 1, 1], [], []>} : vector<8x128xf32>, vector<128x128xf32>, vector<8x128xf32> -> vector<8x128xf32>
      %14 = arith.index_cast %arg1 : i32 to index
      %c0_7 = arith.constant 0 : index
      %c0_8 = arith.constant 0 : index
      %15 = vector.load %arg4[%14, %c0_7, %c0_8] : memref<2x1x128xf32, #tpu.memory_space<vmem>>, vector<1x1x128xf32>
      %16 = vector.shape_cast %15 : vector<1x1x128xf32> to vector<1x128xf32>
      %17 = vector.broadcast %16 : vector<1x128xf32> to vector<8x128xf32>
      %18 = arith.addf %13, %17 : vector<8x128xf32>
      %cst_9 = arith.constant 0.000000e+00 : f32
      %19 = vector.broadcast %cst_9 : f32 to vector<8x128xf32>
      %20 = arith.maximumf %18, %19 : vector<8x128xf32>
      %c0_10 = arith.constant 0 : index
      %c0_11 = arith.constant 0 : index
      %21 = vector.load %arg9[%c0_10, %c0_11] : memref<8x128xf32, #tpu.memory_space<vmem>>, vector<8x128xf32>
      tpu.vector_store %arg9[%c0_10, %c0_11], %20 {strides = array<i32>} : memref<8x128xf32, #tpu.memory_space<vmem>>, vector<8x128xf32>,
    } else {
    }
    %c0_i32_1 = arith.constant 0 : i32
    %3 = arith.cmpi ne, %arg1, %c0_i32_1 : i32
    %4 = arith.extui %3 : i1 to i32
    %c0_i32_2 = arith.constant 0 : i32
    %5 = arith.cmpi ne, %4, %c0_i32_2 : i32
    scf.if %5 {
      %c0 = arith.constant 0 : index
      %c0_4 = arith.constant 0 : index
      %9 = vector.load %arg9[%c0, %c0_4] : memref<8x128xf32, #tpu.memory_space<vmem>>, vector<8x128xf32>
      %10 = arith.index_cast %arg1 : i32 to index
      %c0_5 = arith.constant 0 : index
      %c0_6 = arith.constant 0 : index
      %11 = vector.load %arg3[%10, %c0_5, %c0_6] : memref<2x128x128xf32, #tpu.memory_space<vmem>>, vector<1x128x128xf32>
      %12 = vector.shape_cast %11 : vector<1x128x128xf32> to vector<128x128xf32>
      %cst = arith.constant dense<0.000000e+00> : vector<8x128xf32>
      %13 = tpu.matmul %9, %12, %cst {dimension_numbers = #tpu.dot_dimension_numbers<[1], [0], [0], [1], [0, 0, 1, 1], [], []>} : vector<8x128xf32>, vector<128x128xf32>, vector<8x128xf32> -> vector<8x128xf32>
      %14 = arith.index_cast %arg1 : i32 to index
      %c0_7 = arith.constant 0 : index
      %c0_8 = arith.constant 0 : index
      %15 = vector.load %arg4[%14, %c0_7, %c0_8] : memref<2x1x128xf32, #tpu.memory_space<vmem>>, vector<1x1x128xf32>
      %16 = vector.shape_cast %15 : vector<1x1x128xf32> to vector<1x128xf32>
      %17 = vector.broadcast %16 : vector<1x128xf32> to vector<8x128xf32>
      %18 = arith.addf %13, %17 : vector<8x128xf32>
      %cst_9 = arith.constant 0.000000e+00 : f32
      %19 = vector.broadcast %cst_9 : f32 to vector<8x128xf32>
      %20 = arith.maximumf %18, %19 : vector<8x128xf32>
      %c0_10 = arith.constant 0 : index
      %c0_11 = arith.constant 0 : index
      %21 = vector.load %arg9[%c0_10, %c0_11] : memref<8x128xf32, #tpu.memory_space<vmem>>, vector<8x128xf32>
      tpu.vector_store %arg9[%c0_10, %c0_11], %20 {strides = array<i32>} : memref<8x128xf32, #tpu.memory_space<vmem>>, vector<8x128xf32>,
    } else {
    }
    %c1_i32 = arith.constant 1 : i32
    %6 = arith.cmpi eq, %arg1, %c1_i32 : i32
    %7 = arith.extui %6 : i1 to i32
    %c0_i32_3 = arith.constant 0 : i32
    %8 = arith.cmpi ne, %7, %c0_i32_3 : i32
    scf.if %8 {
      %c0 = arith.constant 0 : index
      %c0_4 = arith.constant 0 : index
      %9 = vector.load %arg9[%c0, %c0_4] : memref<8x128xf32, #tpu.memory_space<vmem>>, vector<8x128xf32>
      %c0_5 = arith.constant 0 : index
      %c0_6 = arith.constant 0 : index
      %10 = vector.load %arg8[%c0_5, %c0_6] : memref<8x128xf32, #tpu.memory_space<vmem>>, vector<8x128xf32>
      tpu.vector_store %arg8[%c0_5, %c0_6], %9 {strides = array<i32>} : memref<8x128xf32, #tpu.memory_space<vmem>>, vector<8x128xf32>,
      %c0_7 = arith.constant 0 : index
      %c0_8 = arith.constant 0 : index
      %11 = vector.load %arg5[%c0_7, %c0_8] : memref<128x128xf32, #tpu.memory_space<vmem>>, vector<128x128xf32>
      %cst = arith.constant dense<0.000000e+00> : vector<8x128xf32>
      %12 = tpu.matmul %9, %11, %cst {dimension_numbers = #tpu.dot_dimension_numbers<[1], [0], [0], [1], [0, 0, 1, 1], [], []>} : vector<8x128xf32>, vector<128x128xf32>, vector<8x128xf32> -> vector<8x128xf32>
      %c0_9 = arith.constant 0 : index
      %c0_10 = arith.constant 0 : index
      %13 = vector.load %arg6[%c0_9, %c0_10] : memref<1x128xf32, #tpu.memory_space<vmem>>, vector<1x128xf32>
      %14 = vector.broadcast %13 : vector<1x128xf32> to vector<8x128xf32>
      %15 = arith.addf %12, %14 : vector<8x128xf32>
      %c0_11 = arith.constant 0 : index
      %c0_12 = arith.constant 0 : index
      %16 = vector.load %arg7[%c0_11, %c0_12] : memref<8x128xf32, #tpu.memory_space<vmem>>, vector<8x128xf32>
      tpu.vector_store %arg7[%c0_11, %c0_12], %15 {strides = array<i32>} : memref<8x128xf32, #tpu.memory_space<vmem>>, vector<8x128xf32>,
    } else {
    }
    return
  }
  func.func @transform_0(%arg0: i32, %arg1: i32) -> (i32, i32) {
    %c0_i32 = arith.constant 0 : i32
    %c0_i32_0 = arith.constant 0 : i32
    return %arg0, %c0_i32 : i32, i32
  }
  func.func @transform_1(%arg0: i32, %arg1: i32) -> (i32, i32, i32) {
    %c0_i32 = arith.constant 0 : i32
    %c0_i32_0 = arith.constant 0 : i32
    %c0_i32_1 = arith.constant 0 : i32
    %c0_i32_2 = arith.constant 0 : i32
    return %c0_i32, %c0_i32_0, %c0_i32_1 : i32, i32, i32
  }
  func.func @transform_2(%arg0: i32, %arg1: i32) -> (i32, i32, i32) {
    %c0_i32 = arith.constant 0 : i32
    %c0_i32_0 = arith.constant 0 : i32
    %c0_i32_1 = arith.constant 0 : i32
    %c0_i32_2 = arith.constant 0 : i32
    return %c0_i32, %c0_i32_0, %c0_i32_1 : i32, i32, i32
  }
  func.func @transform_3(%arg0: i32, %arg1: i32) -> (i32, i32) {
    %c0_i32 = arith.constant 0 : i32
    %c0_i32_0 = arith.constant 0 : i32
    %c0_i32_1 = arith.constant 0 : i32
    return %c0_i32, %c0_i32_0 : i32, i32
  }
  func.func @transform_4(%arg0: i32, %arg1: i32) -> (i32, i32) {
    %c0_i32 = arith.constant 0 : i32
    %c0_i32_0 = arith.constant 0 : i32
    %c0_i32_1 = arith.constant 0 : i32
    return %c0_i32, %c0_i32_0 : i32, i32
  }
  func.func @transform_5(%arg0: i32, %arg1: i32) -> (i32, i32) {
    %c0_i32 = arith.constant 0 : i32
    %c0_i32_0 = arith.constant 0 : i32
    return %arg0, %c0_i32 : i32, i32
  }
  func.func @transform_6(%arg0: i32, %arg1: i32) -> (i32, i32) {
    %c0_i32 = arith.constant 0 : i32
    %c0_i32_0 = arith.constant 0 : i32
    return %arg0, %c0_i32 : i32, i32
  }
}

</mosaic_0001>

<bundles_post_ra>
// kernel: tpu_custom_call.1
= control target key start
LH: loop header
LB: loop body
LE: loop exit
PB: predicated region body
PF: predicated region fallthrough
CT: control target
= control target key end

     0   :  { %12 = vsyncpa [#allocation4], 0  ;;  %s1077_s0 = inlined_call_operand.hbm [shape: f32[8,128], index: 0, kind: input, shape index: {}]   ;;  %s1078_s1 = inlined_call_operand.hbm [shape: f32[2,128,128], index: 1, kind: input, shape index: {}]   ;;  %s1079_s2 = inlined_call_operand.hbm [shape: f32[2,1,128], index: 2, kind: input, shape index: {}]   ;;  %s1080_s3 = inlined_call_operand.hbm [shape: f32[128,128], index: 3, kind: input, shape index: {}]   ;;  %s1081_s4 = inlined_call_operand.vmem [shape: f32[1,128], index: 4, kind: input, shape index: {}]   ;;  %s1082_s5 = inlined_call_operand.hbm [shape: f32[8,128], index: 5, kind: output, shape index: {0}]   ;;  %s1083_s6 = inlined_call_operand.hbm [shape: f32[8,128], index: 6, kind: output, shape index: {1}]  }
   0x1   :  { %13 = vsyncpa [#allocation7], 0 }
   0x2   :  { %14 = vsyncpa [#allocation10], 0 }
   0x3   :  { %15 = vsyncpa [#allocation5], 0 }
   0x4   :  { %16 = vsyncpa [#allocation13], 0  ;;  %s957_s21 = smov 0   ;;  %s959_s22 = smov 0  }
   0x5   :  { %s961_s23 = smov 0  }
   0x6 LB: > { %s226_s26 = sshll.u32 %s1078_s1, 4  ;;  %s584_s27 = sadd.s32 4294967295, %s910_s23   ;;  %s910_s23 = sphi %s961_s23, %s22_s23   ;;  %s906_s22 = sphi %s959_s22, %s1089_s22   ;;  %s902_s21 = sphi %s957_s21, %s1088_s21   ;;  %s227_s26 = int_to_ptr.hbm [resolvable:$true] %s226_s26 }
   0x7   : > { %p585_p0 = scmp.ge.s32.totalorder %s910_s23, 1  ;;  %p201_p1 = scmp.lt.s32.totalorder %s910_s23, 3 }
   0x8   : > { %p980_p2 = scmp.eq.s32.totalorder %s584_s27, 0  ;;  %s912_s30 = smov [#allocation6]  }
   0x9   : > { %p984_p3 = pnand %p585_p0, %p201_p1  ;;  %s228_s7 = sshll.u32 %s912_s30, 4  ;;  %s229_s7 = int_to_ptr.vmem [resolvable:$true] %s228_s7 }
   0xa   : > { %s31_s9 = sadd.s32 1, %s906_s22  ;;  %s913_s10 = smov 128  }
   0xb   : > { %p630_p4 = pneg %p984_p3  ;;  %p32_p6 = scmp.ge.s32.totalorder %s31_s9, 2 }
   0xc   : > { %s914_s11 = smov 8   ;;  %s215_s14 = sshll.u32 %s1077_s0, 4  ;;  %s216_s14 = int_to_ptr.hbm [resolvable:$true] %s215_s14 }
   0xd   : > { %p992_p5 = pnand %p980_p2, %p630_p4  ;;  %s1091_s9 = smov (%p32_p6, %s31_s9), 0 }
   0xe   : > { %s915_s15 = smov [#allocation3]   ;;  %s240_s19 = sshll.u32 %s1079_s2, 4  ;;  %s241_s19 = int_to_ptr.hbm [resolvable:$true] %s240_s19 }
   0xf   : > { %636 = dma.hbm_to_vmem [thread:$0]  (!%p992_p5), %s227_s26, 4096, %s229_s7, [#allocation7], %s913_s10, %s913_s10, %s914_s11  }
  0x10   : > { %s217_s16 = sshll.u32 %s915_s15, 4  ;;  %s916_s20 = smov [#allocation8]   ;;  %s218_s16 = int_to_ptr.vmem [resolvable:$true] %s217_s16 }
  0x11   : > { %633 = dma.hbm_to_vmem [thread:$0]  (!%p992_p5), %s216_s14, 128, %s218_s16, [#allocation4]  }
  0x12   : > { %s242_s24 = sshll.u32 %s916_s20, 4  ;;  %s917_s25 = smov 16   ;;  %s243_s24 = int_to_ptr.vmem [resolvable:$true] %s242_s24 }
  0x13   : > { %s918_s26 = smov 1   ;;  %s254_s12 = sshll.u32 %s1080_s3, 4  ;;  %s255_s12 = int_to_ptr.hbm [resolvable:$true] %s254_s12 }
  0x14   : > { %639 = dma.hbm_to_vmem [thread:$0]  (!%p992_p5), %s241_s19, 32, %s243_s24, [#allocation7], %s917_s25, %s917_s25, %s918_s26  }
  0x15   : > { %s919_s13 = smov [#allocation9]   ;;  %275 = sbr.rel (%p984_p3) target bundleno = 549 (0x225), region = 40 }
  0x16   : > { %s256_s15 = sshll.u32 %s919_s13, 4  ;;  %s257_s15 = int_to_ptr.vmem [resolvable:$true] %s256_s15 }
  0x17   : > { %642 = dma.hbm_to_vmem [thread:$0]  (!%p992_p5), %s255_s12, 2048, %s257_s15, [#allocation10], %s913_s10, %s913_s10, %s914_s11  }
  0x1a   : > { %881 = dma.done.wait (%p980_p2), [#allocation4], 128  }
  0x1b   : > { %883 = vsyncadd (%p980_p2), [#allocation4], 4294967168 }
  0x1c   : > { %885 = dma.done.wait (%p980_p2), [#allocation7], 4128  }
  0x1d   : > { %887 = vsyncadd (%p980_p2), [#allocation7], 4294963168 }
  0x1e   : > { %889 = dma.done.wait (%p980_p2), [#allocation10], 2048  }
  0x1f   : > { %891 = vsyncadd (%p980_p2), [#allocation10], 4294965248  ;;  %p595_p7 = scmp.ne.s32.totalorder %s902_s21, 0 }
  0x20   : > { %s596_s29 = sshll.u32 (!%p595_p7), %s902_s21, 7  ;;  %s334_s8 = scalar_lea.vmem (!%p595_p7), [#allocation8], %s902_s21 }
  0x21   : > { %314 = sbr.rel (%p595_p7) target bundleno = 201 (0xc9), region = 60  ;;  %s317_s10 = scalar_lea.vmem (!%p595_p7), [#allocation6], %s596_s29 }
  0x26   : > { %v333_v0 = vld [vmem:[%s317_s10 + $0x78] sm:$0xff]  ;;  %v332_v1 = vld [vmem:[%s317_s10 + $0x70] sm:$0xff]  ;;  %v331_v2 = vld [vmem:[%s317_s10 + $0x68] sm:$0xff] }
  0x27   : > { %339 = vmatpush.msra.mxu0 %v333_v0  ;;  %v330_v3 = vld [vmem:[%s317_s10 + $0x60] sm:$0xff]  ;;  %v329_v4 = vld [vmem:[%s317_s10 + $0x58] sm:$0xff]  ;;  %v328_v5 = vld [vmem:[%s317_s10 + $0x50] sm:$0xff] }
  0x28   : > { %v327_v6 = vld [vmem:[%s317_s10 + $0x48] sm:$0xff]  ;;  %v326_v7 = vld [vmem:[%s317_s10 + $0x40] sm:$0xff]  ;;  %v325_v8 = vld [vmem:[%s317_s10 + $0x38] sm:$0xff] }
  0x29   : > { %340 = vmatpush.msra.mxu0 %v332_v1  ;;  %v324_v9 = vld [vmem:[%s317_s10 + $0x30] sm:$0xff]  ;;  %v323_v10 = vld [vmem:[%s317_s10 + $0x28] sm:$0xff]  ;;  %v322_v11 = vld [vmem:[%s317_s10 + $0x20] sm:$0xff] }
  0x2a   : > { %v321_v12 = vld [vmem:[%s317_s10 + $0x18] sm:$0xff]  ;;  %v320_v13 = vld [vmem:[%s317_s10 + $0x10] sm:$0xff]  ;;  %v319_v14 = vld [vmem:[%s317_s10 + $0x8] sm:$0xff] }
  0x2b   : > { %341 = vmatpush.msra.mxu0 %v331_v2  ;;  %v318_v15 = vld [vmem:[%s317_s10] sm:$0xff]  ;;  %v315_v16 = vld [vmem:[#allocation3] sm:$0xff] }
  0x2c   : > { %v689_v17 = vld [vmem:[%s334_s8] ss:$0 sm:$0xff] }
  0x2d   : > { %342 = vmatpush.msra.mxu0 %v330_v3 }
  0x2f   : > { %343 = vmatpush.msra.mxu0 %v329_v4 }
  0x31   : > { %344 = vmatpush.msra.mxu0 %v328_v5 }
  0x33   : > { %345 = vmatpush.msra.mxu0 %v327_v6 }
  0x35   : > { %346 = vmatpush.msra.mxu0 %v326_v7 }
  0x37   : > { %347 = vmatpush.msra.mxu0 %v325_v8 }
  0x39   : > { %348 = vmatpush.msra.mxu0 %v324_v9 }
  0x3b   : > { %349 = vmatpush.msra.mxu0 %v323_v10 }
  0x3d   : > { %350 = vmatpush.msra.mxu0 %v322_v11 }
  0x3f   : > { %351 = vmatpush.msra.mxu0 %v321_v12 }
  0x41   : > { %352 = vmatpush.msra.mxu0 %v320_v13 }
  0x43   : > { %353 = vmatpush.msra.mxu0 %v319_v14 }
  0x45   : > { %354 = vmatpush.msra.mxu0 %v318_v15 }
  0x46   : > { %355 = vmatmul.f32.vlgmr.msra.gmra.mxu0 %v315_v16 }
  0xc3   : > { %v356_v18 = vpop.f32.mrf.mxu0 }
  0xc4   : > { %v357_v19 = vadd.f32 %v689_v17, %v356_v18 }
  0xc6   : > { %v359_v20 = vmax.f32 %v357_v19, 0.0 }
  0xc8   : > { %360 = vst [vmem:[#allocation2] sm:$0xff] %v359_v20 }
  0xc9 PF: > { %p597_p8 = scmp.eq.s32.totalorder %s902_s21, 0 }
  0xca   : > { %s598_s28 = sshll.u32 (!%p597_p8), %s902_s21, 7  ;;  %s384_s11 = scalar_lea.vmem (!%p597_p8), [#allocation8], %s902_s21 }
  0xcb   : > { %364 = sbr.rel (%p597_p8) target bundleno = 371 (0x173), region = 64  ;;  %s367_s14 = scalar_lea.vmem (!%p597_p8), [#allocation6], %s598_s28 }
  0xd0   : > { %v383_v21 = vld [vmem:[%s367_s14 + $0x78] sm:$0xff]  ;;  %v382_v22 = vld [vmem:[%s367_s14 + $0x70] sm:$0xff]  ;;  %v381_v23 = vld [vmem:[%s367_s14 + $0x68] sm:$0xff] }
  0xd1   : > { %389 = vmatpush.msra.mxu0 %v383_v21  ;;  %v380_v24 = vld [vmem:[%s367_s14 + $0x60] sm:$0xff]  ;;  %v379_v25 = vld [vmem:[%s367_s14 + $0x58] sm:$0xff]  ;;  %v378_v26 = vld [vmem:[%s367_s14 + $0x50] sm:$0xff] }
  0xd2   : > { %v377_v27 = vld [vmem:[%s367_s14 + $0x48] sm:$0xff]  ;;  %v376_v28 = vld [vmem:[%s367_s14 + $0x40] sm:$0xff]  ;;  %v375_v29 = vld [vmem:[%s367_s14 + $0x38] sm:$0xff] }
  0xd3   : > { %390 = vmatpush.msra.mxu0 %v382_v22  ;;  %v374_v30 = vld [vmem:[%s367_s14 + $0x30] sm:$0xff]  ;;  %v373_v31 = vld [vmem:[%s367_s14 + $0x28] sm:$0xff]  ;;  %v372_v32 = vld [vmem:[%s367_s14 + $0x20] sm:$0xff] }
  0xd4   : > { %v371_v33 = vld [vmem:[%s367_s14 + $0x18] sm:$0xff]  ;;  %v370_v34 = vld [vmem:[%s367_s14 + $0x10] sm:$0xff]  ;;  %v369_v35 = vld [vmem:[%s367_s14 + $0x8] sm:$0xff] }
  0xd5   : > { %391 = vmatpush.msra.mxu0 %v381_v23  ;;  %v368_v36 = vld [vmem:[%s367_s14] sm:$0xff] }
  0xd6   : > { %v365_v37 = vld [vmem:[#allocation2] sm:$0xff] }
  0xd7   : > { %392 = vmatpush.msra.mxu0 %v380_v24  ;;  %v690_v38 = vld [vmem:[%s384_s11] ss:$0 sm:$0xff] }
  0xd9   : > { %393 = vmatpush.msra.mxu0 %v379_v25 }
  0xdb   : > { %394 = vmatpush.msra.mxu0 %v378_v26 }
  0xdd   : > { %395 = vmatpush.msra.mxu0 %v377_v27 }
  0xdf   : > { %396 = vmatpush.msra.mxu0 %v376_v28 }
  0xe1   : > { %397 = vmatpush.msra.mxu0 %v375_v29 }
  0xe3   : > { %398 = vmatpush.msra.mxu0 %v374_v30 }
  0xe5   : > { %399 = vmatpush.msra.mxu0 %v373_v31 }
  0xe7   : > { %400 = vmatpush.msra.mxu0 %v372_v32 }
  0xe9   : > { %401 = vmatpush.msra.mxu0 %v371_v33 }
  0xeb   : > { %402 = vmatpush.msra.mxu0 %v370_v34 }
  0xed   : > { %403 = vmatpush.msra.mxu0 %v369_v35 }
  0xef   : > { %404 = vmatpush.msra.mxu0 %v368_v36 }
  0xf0   : > { %405 = vmatmul.f32.vlgmr.msra.gmra.mxu0 %v365_v37 }
 0x16d   : > { %v406_v39 = vpop.f32.mrf.mxu0 }
 0x16e   : > { %v407_v40 = vadd.f32 %v690_v38, %v406_v39 }
 0x170   : > { %v409_v41 = vmax.f32 %v407_v40, 0.0 }
 0x172   : > { %410 = vst [vmem:[#allocation2] sm:$0xff] %v409_v41 }
 0x173 PF: > { %p599_p9 = scmp.ne.s32.totalorder %s902_s21, 1 }
 0x175   : > { %414 = sbr.rel (%p599_p9) target bundleno = 539 (0x21b), region = 68 }
 0x17a   : > { %v432_v42 = vld [vmem:[#allocation9 + $0x78] sm:$0xff]  ;;  %v431_v43 = vld [vmem:[#allocation9 + $0x70] sm:$0xff]  ;;  %v430_v44 = vld [vmem:[#allocation9 + $0x68] sm:$0xff] }
 0x17b   : > { %437 = vmatpush.msra.mxu0 %v432_v42  ;;  %v429_v45 = vld [vmem:[#allocation9 + $0x60] sm:$0xff]  ;;  %v415_v46 = vld [vmem:[#allocation2] sm:$0xff]  ;;  %v428_v47 = vld [vmem:[#allocation9 + $0x58] sm:$0xff] }
 0x17c   : > { %416 = vst [vmem:[#allocation12] sm:$0xff] %v415_v46  ;;  %v427_v48 = vld [vmem:[#allocation9 + $0x50] sm:$0xff]  ;;  %v426_v49 = vld [vmem:[#allocation9 + $0x48] sm:$0xff]  ;;  %v425_v50 = vld [vmem:[#allocation9 + $0x40] sm:$0xff] }
 0x17d   : > { %438 = vmatpush.msra.mxu0 %v431_v43  ;;  %v424_v51 = vld [vmem:[#allocation9 + $0x38] sm:$0xff]  ;;  %v423_v52 = vld [vmem:[#allocation9 + $0x30] sm:$0xff]  ;;  %v422_v53 = vld [vmem:[#allocation9 + $0x28] sm:$0xff] }
 0x17e   : > { %v421_v54 = vld [vmem:[#allocation9 + $0x20] sm:$0xff]  ;;  %v420_v55 = vld [vmem:[#allocation9 + $0x18] sm:$0xff]  ;;  %v419_v56 = vld [vmem:[#allocation9 + $0x10] sm:$0xff] }
 0x17f   : > { %439 = vmatpush.msra.mxu0 %v430_v44  ;;  %v418_v57 = vld [vmem:[#allocation9 + $0x8] sm:$0xff]  ;;  %v417_v58 = vld [vmem:[#allocation9] sm:$0xff] }
 0x180   : > { %v691_v59 = vld [vmem:[%s1081_s4] ss:$0 sm:$0xff] }
 0x181   : > { %440 = vmatpush.msra.mxu0 %v429_v45 }
 0x183   : > { %441 = vmatpush.msra.mxu0 %v428_v47 }
 0x185   : > { %442 = vmatpush.msra.mxu0 %v427_v48 }
 0x187   : > { %443 = vmatpush.msra.mxu0 %v426_v49 }
 0x189   : > { %444 = vmatpush.msra.mxu0 %v425_v50 }
 0x18b   : > { %445 = vmatpush.msra.mxu0 %v424_v51 }
 0x18d   : > { %446 = vmatpush.msra.mxu0 %v423_v52 }
 0x18f   : > { %447 = vmatpush.msra.mxu0 %v422_v53 }
 0x191   : > { %448 = vmatpush.msra.mxu0 %v421_v54 }
 0x193   : > { %449 = vmatpush.msra.mxu0 %v420_v55 }
 0x195   : > { %450 = vmatpush.msra.mxu0 %v419_v56 }
 0x197   : > { %451 = vmatpush.msra.mxu0 %v418_v57 }
 0x199   : > { %452 = vmatpush.msra.mxu0 %v417_v58 }
 0x19a   : > { %453 = vmatmul.f32.vlgmr.msra.gmra.mxu0 %v415_v46 }
 0x217   : > { %v454_v60 = vpop.f32.mrf.mxu0 }
 0x218   : > { %v455_v61 = vadd.f32 %v691_v59, %v454_v60 }
 0x21a   : > { %457 = vst [vmem:[#allocation11] sm:$0xff] %v455_v61 }
 0x21b PF: > { %p1046_p10 = scmp.eq.s32.totalorder %s584_s27, 1  ;;  %s468_s20 = sshll.u32 %s1082_s5, 4  ;;  %s469_s20 = int_to_ptr.hbm [resolvable:$true] %s468_s20 }
 0x21c   : > { %s920_s24 = smov [#allocation11]   ;;  %s921_s26 = smov [#allocation12]  }
 0x21d   : > { %s466_s25 = sshll.u32 %s920_s24, 4  ;;  %s480_s30 = sshll.u32 %s921_s26, 4  ;;  %s467_s25 = int_to_ptr.vmem [resolvable:$true] %s466_s25  ;;  %s481_s30 = int_to_ptr.vmem [resolvable:$true] %s480_s30 }
 0x21e   : > { %623 = dma.vmem_to_hbm [thread:$0]  (%p1046_p10), %s467_s25, 128, %s469_s20, [#allocation5]  }
 0x21f   : > { %s482_s12 = sshll.u32 %s1083_s6, 4  ;;  %s483_s12 = int_to_ptr.hbm [resolvable:$true] %s482_s12 }
 0x220   : > { %625 = dma.vmem_to_hbm [thread:$0]  (%p1046_p10), %s481_s30, 128, %s483_s12, [#allocation13]  }
 0x221   : > { %893 = dma.done.wait (%p1046_p10), [#allocation5], 128  }
 0x222   : > { %895 = vsyncadd (%p1046_p10), [#allocation5], 4294967168 }
 0x223   : > { %897 = dma.done.wait (%p1046_p10), [#allocation13], 128  }
 0x224   : > { %899 = vsyncadd (%p1046_p10), [#allocation13], 4294967168 }
 0x225 PF: > { %s22_s23 = sadd.s32 1, %s910_s23   ;;  %s1088_s21 = smov %s906_s22 }
 0x226   : > { %p19_p11 = scmp.ge.s32.totalorder %s22_s23, 4   ;;  %s1089_s22 = smov %s1091_s9 }
 0x228   :  { %21 = sbr.rel (!%p19_p11) target bundleno = 6 (0x6), region = 108 }
 0x22d   :  { %501 = vsyncpa [#allocation4], 1 }
 0x22e   :  { %503 = vsyncpa [#allocation4 + $0x1], 1 }
 0x22f   :  { %504 = vsyncpa [#allocation7], 1 }
 0x230   :  { %505 = vsyncpa [#allocation10], 1 }
 0x231   :  { %506 = vsyncpa [#allocation5], 1 }
 0x232   :  { %508 = vsyncpa [#allocation5 + $0x1], 1 }
 0x233   :  { %509 = vsyncpa [#allocation13], 1 }

</bundles_post_ra>
